<compile_context>
chip_gen: v5e
topology: v5e:2x2
jax: 0.10.0
libtpu: 0.0.40
codegen_flags: <defaults>
</compile_context>

<pallas_src>
import jax
import jax.numpy as jnp
from jax import lax
from jax.experimental import pallas as pl
from jax.experimental.pallas import tpu as pltpu

LN_EPS = 1e-5

# Conservative VMEM budgets (bytes) sized for v7x (64 MiB physical per TC);
# v5e/v6e (128 MiB physical) just get extra headroom.
_VMEM_BUDGET = 48 << 20
_WEIGHT_RESIDENT_BUDGET = 24 << 20


def _round_up(n, m):
    return ((n + m - 1) // m) * m


def _cdiv(a, b):
    return (a + b - 1) // b


# --------------------------------------------------------------------------
# Kernels
# --------------------------------------------------------------------------
def _resnet_block_kernel(x_ref, w1_ref, b1_ref, w2_ref, b2_ref, o_ref):
    """Weight-resident path: whole (H, H) weights live in VMEM."""
    x = x_ref[...].astype(jnp.float32)

    # --- LayerNorm statistics in one pass: var = E[x^2] - mean^2 ---
    mean = jnp.mean(x, axis=-1, keepdims=True)
    ex2 = jnp.mean(x * x, axis=-1, keepdims=True)
    var = ex2 - mean * mean
    xn = (x - mean) * lax.rsqrt(var + LN_EPS)

    # --- Linear 1 (gamma/beta folded in by the wrapper) + ReLU ---
    h = jnp.dot(xn.astype(jnp.bfloat16), w1_ref[...],
                preferred_element_type=jnp.float32) + b1_ref[...]
    h = jnp.maximum(h, 0.0)
    # (Dropout: identity in eval mode)

    # --- Linear 2 ---
    y = jnp.dot(h.astype(jnp.bfloat16), w2_ref[...],
                preferred_element_type=jnp.float32) + b2_ref[...]
    # (Dropout: identity in eval mode)

    # --- Residual uses the raw (pre-norm) input ---
    o_ref[...] = (x + y).astype(o_ref.dtype)


def _resnet_block_tiled_kernel(x_ref, w1_ref, b1_ref, w2_ref, b2_ref, o_ref,
                               xn_ref, acc_ref):
    """Weight-tiled path: grid = (row tiles, hidden chunks).

    For hidden chunk j:  acc += relu(xn @ W1[:, j] + b1[j]) @ W2[j, :]
    (ReLU is elementwise, so chunking the inner hidden axis is exact.)
    """
    j = pl.program_id(1)

    @pl.when(j == 0)
    def _():
        x = x_ref[...].astype(jnp.float32)
        mean = jnp.mean(x, axis=-1, keepdims=True)
        ex2 = jnp.mean(x * x, axis=-1, keepdims=True)
        var = ex2 - mean * mean
        xn_ref[...] = ((x - mean) * lax.rsqrt(var + LN_EPS)).astype(jnp.bfloat16)
        acc_ref[...] = jnp.zeros_like(acc_ref)

    h = jnp.dot(xn_ref[...], w1_ref[...],
                preferred_element_type=jnp.float32) + b1_ref[...]
    h = jnp.maximum(h, 0.0)
    # (Dropout: identity in eval mode)
    acc_ref[...] += jnp.dot(h.astype(jnp.bfloat16), w2_ref[...],
                            preferred_element_type=jnp.float32)

    @pl.when(j == pl.num_programs(1) - 1)
    def _():
        x = x_ref[...].astype(jnp.float32)
        o_ref[...] = (x + acc_ref[...] + b2_ref[...]).astype(o_ref.dtype)


# --------------------------------------------------------------------------
# Wrapper helpers
# --------------------------------------------------------------------------
def _fold_and_cast_params(gamma, beta, w1, b1, w2, b2):
    # Constant-fold LayerNorm affine into the first Linear:
    #   (xn*gamma + beta) @ W1 + b1 == xn @ (gamma[:,None]*W1) + (beta @ W1 + b1)
    # Correct because the residual uses raw x, not the normalized value.
    H = w1.shape[0]
    gamma_f = gamma.astype(jnp.float32)
    beta_f = beta.astype(jnp.float32)
    w1_f = w1.astype(jnp.float32)
    w1_fold = gamma_f[:, None] * w1_f
    b1_fold = b1.astype(jnp.float32) + beta_f @ w1_f
    # bf16 weights halve DMA bytes + VMEM; biases stay f32 (added post-accumulation).
    return (w1_fold.astype(jnp.bfloat16),
            b1_fold.reshape(1, H).astype(jnp.float32),
            w2.astype(jnp.bfloat16),
            b2.reshape(1, H).astype(jnp.float32))


def _choose_row_tiles(M, tile_target, per_row_bytes, fixed_bytes):
    """Balanced row tiles under the VMEM budget; no whole-array padding needed."""
    avail = _VMEM_BUDGET - fixed_bytes - (2 << 20)
    cap = max(8, (avail // max(per_row_bytes, 1)) // 8 * 8)
    n_row = max(1, _cdiv(M, tile_target))
    if n_row == 1 and M >= 512:
        n_row = 2  # keep both v7x TensorCores busy on moderate M
    tm = min(_round_up(_cdiv(M, n_row), 8), cap)
    tm = max(8, min(tm, 2048))
    return tm, _cdiv(M, tm)


def _vmem_limit(needed_bytes):
    return int(min(max(needed_bytes * 5 // 4 + (2 << 20), 16 << 20), 64 << 20))


def _resnet_block_resident(x2, w1_bf, b1f, w2_bf, b2f, *, tile_m):
    M, H = x2.shape
    x_bytes = x2.dtype.itemsize
    weight_bytes = (w1_bf.size + w2_bf.size) * 2   # bf16, single-buffered
    bias_bytes = (b1f.size + b2f.size) * 4

    tile_target = tile_m if tile_m is not None else (
        1024 if H <= 512 else (512 if H <= 2048 else 256))
    per_row = 4 * H * x_bytes                      # in + out, double-buffered
    tm, grid_m = _choose_row_tiles(M, tile_target, per_row, weight_bytes + bias_bytes)

    row_spec = pl.BlockSpec((tm, H), lambda i: (i, 0))
    # Grid-invariant weights / biases: fetched once; single-buffer to halve VMEM.
    mat_spec = pl.BlockSpec((H, H), lambda i: (0, 0), pipeline_mode=pl.Buffered(1))
    vec_spec = pl.BlockSpec((1, H), lambda i: (0, 0), pipeline_mode=pl.Buffered(1))

    vmem_need = 2 * tm * H * x_bytes * 2 + weight_bytes + bias_bytes
    cost = pl.CostEstimate(
        flops=4 * M * H * H,                       # two HxH GEMMs over M rows
        transcendentals=M,                         # one rsqrt per row
        bytes_accessed=2 * M * H * x_bytes + weight_bytes + bias_bytes)

    return pl.pallas_call(
        _resnet_block_kernel,
        out_shape=jax.ShapeDtypeStruct((M, H), x2.dtype),
        grid_spec=pltpu.PrefetchScalarGridSpec(
            num_scalar_prefetch=0,
            grid=(grid_m,),
            in_specs=[row_spec, mat_spec, vec_spec, mat_spec, vec_spec],
            out_specs=row_spec),
        compiler_params=pltpu.CompilerParams(
            dimension_semantics=("parallel",),
            vmem_limit_bytes=_vmem_limit(vmem_need)),
        cost_estimate=cost,
    )(x2, w1_bf, b1f, w2_bf, b2f)


def _resnet_block_weight_tiled(x2, w1_bf, b1f, w2_bf, b2f, *, tile_m, tile_n):
    M, H = x2.shape
    x_bytes = x2.dtype.itemsize

    tn = max(128, min(_round_up(tile_n, 128), _round_up(H, 128)))
    Hp = _round_up(H, tn)
    num_n = Hp // tn
    if Hp != H:
        # Zero-pad only the (small) weights along the chunked inner-hidden axis so
        # padded columns of h are exactly zero and contribute nothing to y.
        w1_bf = jnp.pad(w1_bf, ((0, 0), (0, Hp - H)))
        b1f = jnp.pad(b1f, ((0, 0), (0, Hp - H)))
        w2_bf = jnp.pad(w2_bf, ((0, Hp - H), (0, 0)))

    chunk_bytes = 2 * (H * tn + tn * H) * 2        # double-buffered bf16 W1/W2 chunks
    bias_bytes = (b1f.size + b2f.size) * 4
    per_row = 4 * H * x_bytes + 6 * H              # in/out (x2) + bf16 xn + f32 acc scratch
    tile_target = tile_m if tile_m is not None else 256
    tm, grid_m = _choose_row_tiles(M, tile_target, per_row, chunk_bytes + bias_bytes)

    row_spec = pl.BlockSpec((tm, H), lambda i, j: (i, 0))
    w1_spec = pl.BlockSpec((H, tn), lambda i, j: (0, j))
    b1_spec = pl.BlockSpec((1, tn), lambda i, j: (0, j))
    w2_spec = pl.BlockSpec((tn, H), lambda i, j: (j, 0))
    b2_spec = pl.BlockSpec((1, H), lambda i, j: (0, 0), pipeline_mode=pl.Buffered(1))

    vmem_need = (2 * tm * H * x_bytes * 2 + chunk_bytes + bias_bytes
                 + tm * H * (2 + 4))
    cost = pl.CostEstimate(
        flops=4 * M * H * Hp,
        transcendentals=M,
        bytes_accessed=(2 * M * H * x_bytes
                        + (w1_bf.size + w2_bf.size) * 2 + bias_bytes))

    return pl.pallas_call(
        _resnet_block_tiled_kernel,
        out_shape=jax.ShapeDtypeStruct((M, H), x2.dtype),
        grid_spec=pltpu.PrefetchScalarGridSpec(
            num_scalar_prefetch=0,
            grid=(grid_m, num_n),
            in_specs=[row_spec, w1_spec, b1_spec, w2_spec, b2_spec],
            out_specs=row_spec,
            scratch_shapes=[pltpu.VMEM((tm, H), jnp.bfloat16),
                            pltpu.VMEM((tm, H), jnp.float32)]),
        compiler_params=pltpu.CompilerParams(
            dimension_semantics=("parallel", "arbitrary"),
            vmem_limit_bytes=_vmem_limit(vmem_need)),
        cost_estimate=cost,
    )(x2, w1_bf, b1f, w2_bf, b2f)


def resnet_block(x, gamma, beta, w1, b1, w2, b2, *, tile_m=None,
                 weight_tile_n=512, force_weight_tiling=False):
    """Fused ResNetBlock forward (inference-mode dropout).

    x: (..., H).  w1, w2: (H, H) in (in, out) layout (i.e. PyTorch weight.T).
    Output dtype == x dtype (bf16 activations supported; LN stats and GEMM
    accumulation stay in f32 inside the kernel).
    """
    orig_shape = x.shape
    H = orig_shape[-1]
    x2 = x.reshape(-1, H)

    w1_bf, b1f, w2_bf, b2f = _fold_and_cast_params(gamma, beta, w1, b1, w2, b2)

    resident_weight_bytes = (w1_bf.size + w2_bf.size) * 2
    use_tiled = force_weight_tiling or resident_weight_bytes > _WEIGHT_RESIDENT_BUDGET

    if use_tiled:
        out2 = _resnet_block_weight_tiled(x2, w1_bf, b1f, w2_bf, b2f,
                                          tile_m=tile_m, tile_n=weight_tile_n)
    else:
        out2 = _resnet_block_resident(x2, w1_bf, b1f, w2_bf, b2f, tile_m=tile_m)
    return out2.reshape(orig_shape)


# --------------------------------------------------------------------------
# Pure-JAX reference
# --------------------------------------------------------------------------
def reference(x, gamma, beta, w1, b1, w2, b2):
    xf = x.astype(jnp.float32)
    mean = jnp.mean(xf, axis=-1, keepdims=True)
    var = jnp.mean((xf - mean) ** 2, axis=-1, keepdims=True)
    xn = (xf - mean) / jnp.sqrt(var + LN_EPS)
    xn = xn * gamma + beta
    h = jnp.maximum(xn @ w1 + b1, 0.0)
    y = h @ w2 + b2
    return (xf + y).astype(x.dtype)


if __name__ == "__main__":
    key = jax.random.PRNGKey(0)

    def make_inputs(k, B, S, H):
        ks = jax.random.split(k, 7)
        x = jax.random.normal(ks[0], (B, S, H), dtype=jnp.float32)
        gamma = 1.0 + 0.1 * jax.random.normal(ks[1], (H,), dtype=jnp.float32)
        beta = 0.1 * jax.random.normal(ks[2], (H,), dtype=jnp.float32)
        bound = 1.0 / (H ** 0.5)
        w1 = jax.random.uniform(ks[3], (H, H), minval=-bound, maxval=bound,
                                dtype=jnp.float32)
        b1 = jax.random.uniform(ks[4], (H,), minval=-bound, maxval=bound,
                                dtype=jnp.float32)
        w2 = jax.random.uniform(ks[5], (H, H), minval=-bound, maxval=bound,
                                dtype=jnp.float32)
        b2 = jax.random.uniform(ks[6], (H,), minval=-bound, maxval=bound,
                                dtype=jnp.float32)
        return x, gamma, beta, w1, b1, w2, b2

    def check(name, out, ref):
        out = jax.block_until_ready(out)
        assert out.shape == ref.shape and out.dtype == ref.dtype
        err = float(jnp.max(jnp.abs(out.astype(jnp.float32) - ref.astype(jnp.float32))))
        # Relaxed tolerance: GEMM operands are bf16 (f32 accumulation).
        assert jnp.allclose(out, ref, atol=5e-2, rtol=5e-2), \
            f"{name}: mismatch vs reference (max |err| = {err})"

    k0, k1, k2 = jax.random.split(key, 3)

    # 1) Weight-resident path (H = 128 -> lane-dense stores).
    args = make_inputs(k0, 2, 8, 128)
    check("resident", resnet_block(*args), reference(*args))

    # 2) Resident path with a row count that does not divide the row tile
    #    (exercises Pallas boundary masking instead of a jnp.pad round-trip).
    args = make_inputs(k1, 2, 12, 128)
    check("boundary", resnet_block(*args, tile_m=16), reference(*args))

    # 3) Weight-tiled (large-H / v7x) path, forced at a small size so the
    #    multi-step hidden-chunk reduction is validated against the reference.
    args = make_inputs(k2, 2, 8, 256)
    check("weight_tiled",
          resnet_block(*args, force_weight_tiling=True, weight_tile_n=128),
          reference(*args))

    print("KERNEL_OK")
</pallas_src>

<mosaic_0001>
module attributes {stable_mosaic.version = 11 : i64} {
  func.func @_resnet_block_kernel(%arg0: i32, %arg1: memref<16x128xf32, #tpu.memory_space<vmem>>, %arg2: memref<128x128xbf16, #tpu.memory_space<vmem>>, %arg3: memref<1x128xf32, #tpu.memory_space<vmem>>, %arg4: memref<128x128xbf16, #tpu.memory_space<vmem>>, %arg5: memref<1x128xf32, #tpu.memory_space<vmem>>, %arg6: memref<16x128xf32, #tpu.memory_space<vmem>>) attributes {dimension_semantics = [#tpu.dimension_semantics<parallel>], iteration_bounds = array<i64: 1>, scalar_prefetch = 0 : i64, scratch_operands = 0 : i64, tpu.core_type = #tpu.core_type<tc>, window_params = [{transform_indices = @transform_0, window_bounds = array<i64: 16, 128>}, {pipeline_mode = #tpu.pipeline_mode<synchronous>, transform_indices = @transform_1, window_bounds = array<i64: 128, 128>}, {pipeline_mode = #tpu.pipeline_mode<synchronous>, transform_indices = @transform_2, window_bounds = array<i64: 1, 128>}, {pipeline_mode = #tpu.pipeline_mode<synchronous>, transform_indices = @transform_3, window_bounds = array<i64: 128, 128>}, {pipeline_mode = #tpu.pipeline_mode<synchronous>, transform_indices = @transform_4, window_bounds = array<i64: 1, 128>}, {transform_indices = @transform_5, window_bounds = array<i64: 16, 128>}]} {
    %c0 = arith.constant 0 : index
    %c0_0 = arith.constant 0 : index
    %0 = vector.load %arg1[%c0, %c0_0] : memref<16x128xf32, #tpu.memory_space<vmem>>, vector<16x128xf32>
    %cst = arith.constant dense<0.000000e+00> : vector<16xf32>
    %1 = vector.multi_reduction <add>, %0, %cst [1] : vector<16x128xf32> to vector<16xf32>
    %2 = vector.shape_cast %1 : vector<16xf32> to vector<16x1xf32>
    %cst_1 = arith.constant 1.280000e+02 : f32
    %3 = vector.broadcast %cst_1 : f32 to vector<16x1xf32>
    %4 = arith.divf %2, %3 : vector<16x1xf32>
    %5 = arith.mulf %0, %0 : vector<16x128xf32>
    %cst_2 = arith.constant dense<0.000000e+00> : vector<16xf32>
    %6 = vector.multi_reduction <add>, %5, %cst_2 [1] : vector<16x128xf32> to vector<16xf32>
    %7 = vector.shape_cast %6 : vector<16xf32> to vector<16x1xf32>
    %cst_3 = arith.constant 1.280000e+02 : f32
    %8 = vector.broadcast %cst_3 : f32 to vector<16x1xf32>
    %9 = arith.divf %7, %8 : vector<16x1xf32>
    %10 = arith.mulf %4, %4 : vector<16x1xf32>
    %11 = arith.subf %9, %10 : vector<16x1xf32>
    %12 = vector.broadcast %4 : vector<16x1xf32> to vector<16x128xf32>
    %13 = arith.subf %0, %12 : vector<16x128xf32>
    %cst_4 = arith.constant 9.99999974E-6 : f32
    %14 = vector.broadcast %cst_4 : f32 to vector<16x1xf32>
    %15 = arith.addf %11, %14 : vector<16x1xf32>
    %16 = math.rsqrt %15 : vector<16x1xf32>
    %17 = vector.broadcast %16 : vector<16x1xf32> to vector<16x128xf32>
    %18 = arith.mulf %13, %17 : vector<16x128xf32>
    %19 = arith.truncf %18 : vector<16x128xf32> to vector<16x128xbf16>
    %c0_5 = arith.constant 0 : index
    %c0_6 = arith.constant 0 : index
    %20 = vector.load %arg2[%c0_5, %c0_6] : memref<128x128xbf16, #tpu.memory_space<vmem>>, vector<128x128xbf16>
    %cst_7 = arith.constant dense<0.000000e+00> : vector<16x128xf32>
    %21 = tpu.matmul %19, %20, %cst_7 {dimension_numbers = #tpu.dot_dimension_numbers<[1], [0], [0], [1], [0, 0, 1, 1], [], []>} : vector<16x128xbf16>, vector<128x128xbf16>, vector<16x128xf32> -> vector<16x128xf32>
    %c0_8 = arith.constant 0 : index
    %c0_9 = arith.constant 0 : index
    %22 = vector.load %arg3[%c0_8, %c0_9] : memref<1x128xf32, #tpu.memory_space<vmem>>, vector<1x128xf32>
    %23 = vector.broadcast %22 : vector<1x128xf32> to vector<16x128xf32>
    %24 = arith.addf %21, %23 : vector<16x128xf32>
    %cst_10 = arith.constant 0.000000e+00 : f32
    %25 = vector.broadcast %cst_10 : f32 to vector<16x128xf32>
    %26 = arith.maximumf %24, %25 : vector<16x128xf32>
    %27 = arith.truncf %26 : vector<16x128xf32> to vector<16x128xbf16>
    %c0_11 = arith.constant 0 : index
    %c0_12 = arith.constant 0 : index
    %28 = vector.load %arg4[%c0_11, %c0_12] : memref<128x128xbf16, #tpu.memory_space<vmem>>, vector<128x128xbf16>
    %cst_13 = arith.constant dense<0.000000e+00> : vector<16x128xf32>
    %29 = tpu.matmul %27, %28, %cst_13 {dimension_numbers = #tpu.dot_dimension_numbers<[1], [0], [0], [1], [0, 0, 1, 1], [], []>} : vector<16x128xbf16>, vector<128x128xbf16>, vector<16x128xf32> -> vector<16x128xf32>
    %c0_14 = arith.constant 0 : index
    %c0_15 = arith.constant 0 : index
    %30 = vector.load %arg5[%c0_14, %c0_15] : memref<1x128xf32, #tpu.memory_space<vmem>>, vector<1x128xf32>
    %31 = vector.broadcast %30 : vector<1x128xf32> to vector<16x128xf32>
    %32 = arith.addf %29, %31 : vector<16x128xf32>
    %33 = arith.addf %0, %32 : vector<16x128xf32>
    %c0_16 = arith.constant 0 : index
    %c0_17 = arith.constant 0 : index
    %34 = vector.load %arg6[%c0_16, %c0_17] : memref<16x128xf32, #tpu.memory_space<vmem>>, vector<16x128xf32>
    tpu.vector_store %arg6[%c0_16, %c0_17], %33 {strides = array<i32>} : memref<16x128xf32, #tpu.memory_space<vmem>>, vector<16x128xf32>,
    return
  }
  func.func @transform_0(%arg0: i32) -> (i32, i32) {
    %c0_i32 = arith.constant 0 : i32
    %c0_i32_0 = arith.constant 0 : i32
    return %arg0, %c0_i32 : i32, i32
  }
  func.func @transform_1(%arg0: i32) -> (i32, i32) {
    %c0_i32 = arith.constant 0 : i32
    %c0_i32_0 = arith.constant 0 : i32
    %c0_i32_1 = arith.constant 0 : i32
    return %c0_i32, %c0_i32_0 : i32, i32
  }
  func.func @transform_2(%arg0: i32) -> (i32, i32) {
    %c0_i32 = arith.constant 0 : i32
    %c0_i32_0 = arith.constant 0 : i32
    %c0_i32_1 = arith.constant 0 : i32
    return %c0_i32, %c0_i32_0 : i32, i32
  }
  func.func @transform_3(%arg0: i32) -> (i32, i32) {
    %c0_i32 = arith.constant 0 : i32
    %c0_i32_0 = arith.constant 0 : i32
    %c0_i32_1 = arith.constant 0 : i32
    return %c0_i32, %c0_i32_0 : i32, i32
  }
  func.func @transform_4(%arg0: i32) -> (i32, i32) {
    %c0_i32 = arith.constant 0 : i32
    %c0_i32_0 = arith.constant 0 : i32
    %c0_i32_1 = arith.constant 0 : i32
    return %c0_i32, %c0_i32_0 : i32, i32
  }
  func.func @transform_5(%arg0: i32) -> (i32, i32) {
    %c0_i32 = arith.constant 0 : i32
    %c0_i32_0 = arith.constant 0 : i32
    return %arg0, %c0_i32 : i32, i32
  }
}

</mosaic_0001>

<bundles_post_ra>
// kernel: tpu_custom_call.1
= control target key start
LH: loop header
LB: loop body
LE: loop exit
PB: predicated region body
PF: predicated region fallthrough
CT: control target
= control target key end

     0   :  { %10 = vsyncpa [#allocation3], 0  ;;  %s589_s0 = inlined_call_operand.hbm [shape: f32[16,128], index: 0, kind: input, shape index: {}]   ;;  %s590_s1 = inlined_call_operand.hbm [shape: bf16[128,128], index: 1, kind: input, shape index: {}]   ;;  %s591_s2 = inlined_call_operand.vmem [shape: f32[1,128], index: 2, kind: input, shape index: {}]   ;;  %s592_s3 = inlined_call_operand.hbm [shape: bf16[128,128], index: 3, kind: input, shape index: {}]   ;;  %s593_s4 = inlined_call_operand.vmem [shape: f32[1,128], index: 4, kind: input, shape index: {}]   ;;  %s594_s5 = inlined_call_operand.hbm [shape: f32[16,128], index: 5, kind: output, shape index: {}]  }
   0x1   :  { %11 = vsyncpa [#allocation6], 0  ;;  %s30_s20 = sshll.u32 %s590_s1, 4  ;;  %s31_s20 = int_to_ptr.hbm [resolvable:$true] %s30_s20 }
   0x2   :  { %12 = vsyncpa [#allocation4], 0  ;;  %s512_s21 = smov [#allocation5]   ;;  %s17_s25 = sshll.u32 %s589_s0, 4  ;;  %s18_s25 = int_to_ptr.hbm [resolvable:$true] %s17_s25 }
   0x3   :  { %s32_s22 = sshll.u32 %s512_s21, 4  ;;  %s513_s26 = smov 64   ;;  %s33_s22 = int_to_ptr.vmem [resolvable:$true] %s32_s22 }
   0x4   :  { %s514_s27 = smov 4   ;;  %s515_s28 = smov [#allocation2]  }
   0x5   :  { %38 = dma.hbm_to_vmem [thread:$0]  %s31_s20, 1024, %s33_s22, [#allocation6], %s513_s26, %s513_s26, %s514_s27  }
   0x6   :  { %s19_s29 = sshll.u32 %s515_s28, 4  ;;  %s516_s30 = smov 128   ;;  %s20_s29 = int_to_ptr.vmem [resolvable:$true] %s19_s29 }
   0x7   :  { %s517_s6 = smov 8   ;;  %s45_s8 = sshll.u32 %s592_s3, 4  ;;  %s46_s8 = int_to_ptr.hbm [resolvable:$true] %s45_s8 }
   0x8   :  { %25 = dma.hbm_to_vmem [thread:$0]  %s18_s25, 256, %s20_s29, [#allocation3], %s516_s30, %s516_s30, %s517_s6  }
   0x9   :  { %s518_s9 = smov [#allocation7]  }
   0xa   :  { %s47_s0 = sshll.u32 %s518_s9, 4  ;;  %s48_s0 = int_to_ptr.vmem [resolvable:$true] %s47_s0 }
   0xb   :  { %53 = dma.hbm_to_vmem [thread:$0]  %s46_s8, 1024, %s48_s0, [#allocation6], %s513_s26, %s513_s26, %s514_s27  }
   0xc   :  { %506 = dma.done.wait [#allocation3], 256  }
   0xd   :  { %507 = vsyncadd [#allocation3], 4294967040 }
   0xe   :  { %508 = dma.done.wait [#allocation6], 2048  }
   0xf   :  { %509 = vsyncadd [#allocation6], 4294965248  ;;  %v563_v0 = vld [vmem:[#allocation2] sm:$0xff]  ;;  %v568_v2 = vld [vmem:[#allocation2 + $0x8] sm:$0xff]  ;;  %v519_v4 = vmov 128.0   ;;  %s520_s13 = smov [#allocation8]  }
  0x10   :  { %70 = vadd.xlane.f32.xlu0 %v563_v0  ;;  %v83_v1 = vmul.f32 %v563_v0, %v563_v0  ;;  %v84_v3 = vmul.f32 %v568_v2, %v568_v2  ;;  %404 = vrcp.f32 %v519_v4  ;;  %v384_v5 = vld [vmem:[#allocation5 + $0x38] sm:$0xff]  ;;  %v383_v6 = vld [vmem:[#allocation5 + $0x30] sm:$0xff]  ;;  %v382_v9 = vld [vmem:[#allocation5 + $0x28] sm:$0xff]  ;;  %s297_s14 = sshll.u32 %s520_s13, 4  ;;  %s299_s16 = sshll.u32 %s594_s5, 4  ;;  %s298_s14 = int_to_ptr.vmem [resolvable:$true] %s297_s14  ;;  %s300_s16 = int_to_ptr.hbm [resolvable:$true] %s299_s16 }
  0x11   :  { %190 = vmatpush.bf16.msra.mxu0 %v384_v5  ;;  %v381_v11 = vld [vmem:[#allocation5 + $0x20] sm:$0xff]  ;;  %v380_v13 = vld [vmem:[#allocation5 + $0x18] sm:$0xff]  ;;  %v379_v15 = vld [vmem:[#allocation5 + $0x10] sm:$0xff] }
  0x12   :  { %85 = vadd.xlane.f32.xlu1 %v83_v1  ;;  %v378_v17 = vld [vmem:[#allocation5 + $0x8] sm:$0xff]  ;;  %v377_v19 = vld [vmem:[#allocation5] sm:$0xff]  ;;  %v392_v26 = vld [vmem:[#allocation7 + $0x38] sm:$0xff] }
  0x13   :  { %275 = vmatpush.bf16.msra.mxu1 %v392_v26  ;;  %v391_v29 = vld [vmem:[#allocation7 + $0x30] sm:$0xff]  ;;  %v390_v34 = vld [vmem:[#allocation7 + $0x28] sm:$0xff]  ;;  %v389_v38 = vld [vmem:[#allocation7 + $0x20] sm:$0xff] }
  0x14   :  { %v388_v56 = vld [vmem:[#allocation7 + $0x18] sm:$0xff]  ;;  %v387_v57 = vld [vmem:[#allocation7 + $0x10] sm:$0xff]  ;;  %v386_v58 = vld [vmem:[#allocation7 + $0x8] sm:$0xff] }
  0x15   :  { %191 = vmatpush.bf16.msra.mxu0 %v383_v6  ;;  %v385_v59 = vld [vmem:[#allocation7] sm:$0xff]  ;;  %v402_v61 = vld [vmem:[%s591_s2] ss:$0 sm:$0xff] }
  0x16   :  { %v405_v7 = vpop.eup %404  ;;  %v403_v6 = vld [vmem:[%s593_s4] ss:$0 sm:$0xff] }
  0x17   :  { %v75_v8 = vmul.f32 128.0, %v405_v7  ;;  %vm79_vm0 = vweird.f32 %v405_v7  ;;  %276 = vmatpush.bf16.msra.mxu1 %v391_v29 }
  0x18   :  { %72 = vadd.xlane.f32.xlu0 %v568_v2 }
  0x19   :  { %192 = vmatpush.bf16.msra.mxu0 %v382_v9  ;;  %v76_v10 = vsub.f32 1.0, %v75_v8 }
  0x1a   :  { %87 = vadd.xlane.f32.xlu1 %v84_v3 }
  0x1b   :  { %v77_v12 = vmul.f32 %v405_v7, %v76_v10  ;;  %277 = vmatpush.bf16.msra.mxu1 %v390_v34 }
  0x1d   :  { %193 = vmatpush.bf16.msra.mxu0 %v381_v11  ;;  %v78_v14 = vadd.f32 %v405_v7, %v77_v12 }
  0x1f   :  { %v80_v16 = vsel %vm79_vm0, %v405_v7, %v78_v14  ;;  %278 = vmatpush.bf16.msra.mxu1 %v389_v38 }
  0x21   :  { %194 = vmatpush.bf16.msra.mxu0 %v380_v13 }
  0x23   :  { %279 = vmatpush.bf16.msra.mxu1 %v388_v56 }
  0x25   :  { %195 = vmatpush.bf16.msra.mxu0 %v379_v15 }
  0x27   :  { %280 = vmatpush.bf16.msra.mxu1 %v387_v57 }
  0x29   :  { %196 = vmatpush.bf16.msra.mxu0 %v378_v17 }
  0x2b   :  { %281 = vmatpush.bf16.msra.mxu1 %v386_v58 }
  0x2d   :  { %197 = vmatpush.bf16.msra.mxu0 %v377_v19 }
  0x2f   :  { %282 = vmatpush.bf16.msra.mxu1 %v385_v59 }
  0x83   :  { %v71_v18 = vpop.xlane.xlu0 %70 }
  0x84   :  { %v81_v20 = vmul.f32 %v80_v16, %v71_v18 }
  0x85   :  { %v86_v21 = vpop.xlane.xlu1 %85 }
  0x86   :  { %v91_v22 = vmul.f32 %v81_v20, %v81_v20  ;;  %v89_v23 = vmul.f32 %v86_v21, %v80_v16  ;;  %v95_v50 = vsub.f32 %v563_v0, %v81_v20 }
  0x88   :  { %v93_v24 = vsub.f32 %v89_v23, %v91_v22 }
  0x8a   :  { %v97_v25 = vadd.f32 1e-05, %v93_v24 }
  0x8b   :  { %v73_v27 = vpop.xlane.xlu0 %72 }
  0x8c   :  { %406 = vrsqrt.f32 %v97_v25  ;;  %v82_v28 = vmul.f32 %v80_v16, %v73_v27  ;;  %vm105_vm2 = vweird.f32 %v97_v25 }
  0x8d   :  { %v88_v30 = vpop.xlane.xlu1 %87 }
  0x8e   :  { %v92_v31 = vmul.f32 %v82_v28, %v82_v28  ;;  %v90_v32 = vmul.f32 %v88_v30, %v80_v16  ;;  %v96_v51 = vsub.f32 %v568_v2, %v82_v28 }
  0x90   :  { %v94_v33 = vsub.f32 %v90_v32, %v92_v31 }
  0x92   :  { %v407_v35 = vpop.eup %406  ;;  %v98_v36 = vadd.f32 1e-05, %v94_v33 }
  0x93   :  { %v100_v37 = vmul.f32 %v407_v35, %v97_v25  ;;  %vm106_vm1 = vweird.f32 %v407_v35 }
  0x94   :  { %408 = vrsqrt.f32 %v98_v36  ;;  %vm107_vm4 = vmor %vm105_vm2, %vm106_vm1  ;;  %vm115_vm5 = vweird.f32 %v98_v36 }
  0x95   :  { %v101_v39 = vmul.f32 %v407_v35, %v100_v37 }
  0x97   :  { %v102_v40 = vmul.f32 0.5, %v101_v39 }
  0x99   :  { %v103_v42 = vsub.f32 1.5, %v102_v40 }
  0x9a   :  { %v409_v41 = vpop.eup %408 }
  0x9b   :  { %v110_v43 = vmul.f32 %v409_v41, %v98_v36  ;;  %v104_v46 = vmul.f32 %v407_v35, %v103_v42  ;;  %vm116_vm3 = vweird.f32 %v409_v41 }
  0x9c   :  { %vm117_vm6 = vmor %vm115_vm5, %vm116_vm3 }
  0x9d   :  { %v111_v44 = vmul.f32 %v409_v41, %v110_v43  ;;  %v108_v48 = vsel %vm107_vm4, %v407_v35, %v104_v46 }
  0x9e   :  { %v119_v53 = vmul.f32 %v108_v48, %v95_v50 }
  0x9f   :  { %v112_v45 = vmul.f32 0.5, %v111_v44 }
  0xa1   :  { %v113_v47 = vsub.f32 1.5, %v112_v45 }
  0xa3   :  { %v114_v49 = vmul.f32 %v409_v41, %v113_v47 }
  0xa5   :  { %v118_v52 = vsel %vm117_vm6, %v409_v41, %v114_v49 }
  0xa6   :  { %v120_v54 = vmul.f32 %v118_v52, %v96_v51 }
  0xa8   :  { %v121_v55 = vpack.c.bf16 %v120_v54, %v119_v53 }
  0xaa   :  { %198 = vmatmul.bf16.vlgmr.msra.gmra.mxu0 %v121_v55 }
 0x127   :  { %v199_v60 = vpop.f32.mrf.mxu0 }
 0x128   :  { %v200_v62 = vadd.f32 %v402_v61, %v199_v60 }
 0x12a   :  { %v204_v3 = vmax.f32 %v200_v62, 0.0 }
 0x12f   :  { %v201_v63 = vpop.f32.mrf.mxu0 }
 0x130   :  { %v202_v1 = vadd.f32 %v402_v61, %v201_v63 }
 0x132   :  { %v205_v4 = vmax.f32 %v202_v1, 0.0 }
 0x134   :  { %v206_v5 = vpack.c.bf16 %v205_v4, %v204_v3 }
 0x136   :  { %283 = vmatmul.bf16.vlgmr.msra.gmra.mxu1 %v206_v5 }
 0x1b3   :  { %v284_v7 = vpop.f32.mrf.mxu1 }
 0x1b4   :  { %v285_v8 = vadd.f32 %v403_v6, %v284_v7 }
 0x1b6   :  { %v289_v9 = vadd.f32 %v285_v8, %v563_v0 }
 0x1b8   :  { %291 = vst [vmem:[#allocation8] sm:$0xff] %v289_v9 }
 0x1bb   :  { %v286_v10 = vpop.f32.mrf.mxu1 }
 0x1bc   :  { %v287_v11 = vadd.f32 %v403_v6, %v286_v10 }
 0x1be   :  { %v290_v12 = vadd.f32 %v287_v11, %v568_v2 }
 0x1c0   :  { %292 = vst [vmem:[#allocation8 + $0x8] sm:$0xff] %v290_v12 }
 0x1c1   :  { %305 = dma.vmem_to_hbm [thread:$0]  %s298_s14, 256, %s300_s16, [#allocation4], %s516_s30, %s516_s30, %s517_s6  }
 0x1c2   :  { %510 = dma.done.wait [#allocation4], 256  }
 0x1c3   :  { %511 = vsyncadd [#allocation4], 4294967040 }
 0x1c4   :  { %310 = vsyncpa [#allocation3], 1 }
 0x1c5   :  { %311 = vsyncpa [#allocation6], 1 }
 0x1c6   :  { %312 = vsyncpa [#allocation4], 1 }

</bundles_post_ra>
